<compile_context>
chip_gen: v5e
topology: v5e:2x2
jax: 0.10.0
libtpu: 0.0.40
codegen_flags: <defaults>
</compile_context>

<pallas_src>
import functools

import jax
import jax.numpy as jnp
from jax import lax
from jax.experimental import pallas as pl
from jax.experimental.pallas import tpu as pltpu


def _round_up(x: int, m: int) -> int:
    return (x + m - 1) // m * m


# ---------------------------------------------------------------------------
# Per-generation defaults (VMEM scoped limit, VMEM budget for residency
# decisions, projection tile defaults).
# ---------------------------------------------------------------------------
def _hw_defaults():
    try:
        cap = int(pltpu.get_tpu_info().vmem_capacity_bytes)
    except Exception:
        cap = 64 * 1024 * 1024                       # conservative (v7x-sized)
    if cap >= 96 * 1024 * 1024:
        # v5e / v6e: 128 MiB physical VMEM -> big tiles, ~100 MiB scoped limit.
        limit, tm, tn, tk = 100 * 1024 * 1024, 512, 1024, 1024
    else:
        # v7x: 64 MiB per TensorCore -> cap ~56 MiB, smaller tn.
        limit, tm, tn, tk = 56 * 1024 * 1024, 256, 512, 512
    limit = min(limit, int(cap * 0.9))
    return dict(vmem_limit=limit, budget=int(limit * 0.8), tm=tm, tn=tn, tk=tk)


# ---------------------------------------------------------------------------
# Lookup path A (small vocab): whole [V, E] table VMEM-resident, gather a
# dense (T, E) block of rows per grid step via a one-hot MXU matmul.
# ---------------------------------------------------------------------------
def _embed_onehot_kernel(ids_ref, w_ref, out_ref):
    T = out_ref.shape[0]
    V = w_ref.shape[0]
    ids = ids_ref[...]                                          # (T, 1) int32
    # One-hot built directly in the table dtype (bf16 table -> bf16 MXU input).
    onehot = (ids == lax.broadcasted_iota(jnp.int32, (T, V), 1)).astype(w_ref.dtype)
    out_ref[...] = jnp.dot(
        onehot, w_ref[...], preferred_element_type=jnp.float32
    ).astype(out_ref.dtype)


def _onehot_lookup_call(ids2d, w, T, *, single_buffer_table, vmem_limit):
    ntok_pad = ids2d.shape[0]
    V, E = w.shape
    # Constant block index -> fetched once; Buffered(1) drops the second buffer
    # so twice the vocab fits VMEM (important on v7x's 64 MiB per core).
    table_kwargs = {"pipeline_mode": pl.Buffered(1)} if single_buffer_table else {}
    return pl.pallas_call(
        _embed_onehot_kernel,
        out_shape=jax.ShapeDtypeStruct((ntok_pad, E), w.dtype),
        grid_spec=pltpu.PrefetchScalarGridSpec(
            num_scalar_prefetch=0,
            grid=(ntok_pad // T,),
            in_specs=[
                pl.BlockSpec((T, 1), lambda i: (i, 0)),           # token ids
                pl.BlockSpec((V, E), lambda i: (0, 0), **table_kwargs),
            ],
            out_specs=pl.BlockSpec((T, E), lambda i: (i, 0)),
        ),
        compiler_params=pltpu.CompilerParams(
            dimension_semantics=("parallel",),                    # megacore on v7x
            vmem_limit_bytes=vmem_limit,
        ),
    )(ids2d, w)


# ---------------------------------------------------------------------------
# Lookup path B (large vocab): ids scalar-prefetched into SMEM, w stays in HBM,
# rows gathered with pipelined per-row DMAs (nsem outstanding) into a VMEM
# buffer, then written as one dense lane-aligned (T, E) block.
# ---------------------------------------------------------------------------
def _embed_gather_kernel(nsem, ids_ref, w_hbm, o_ref, buf, sems):
    i = pl.program_id(0)
    T = o_ref.shape[0]

    def start(t):
        row = ids_ref[i * T + t]
        pltpu.make_async_copy(w_hbm.at[row], buf.at[t], sems.at[t % nsem]).start()

    def wait(t):
        pltpu.make_async_copy(w_hbm.at[0], buf.at[t], sems.at[t % nsem]).wait()

    @pl.loop(0, nsem)                       # prime nsem outstanding row DMAs
    def _prime(t):
        start(t)

    @pl.loop(nsem, T)                       # steady state: wait oldest, issue next
    def _steady(t):
        wait(t - nsem)
        start(t)

    @pl.loop(T - nsem, T)                   # drain
    def _drain(t):
        wait(t)

    o_ref[...] = buf[...]                   # single dense lane-aligned store


def _dma_gather_lookup_call(ids_flat, w, T, *, vmem_limit):
    ntok_pad = ids_flat.shape[0]
    V, E = w.shape
    nsem = min(8, T)
    return pl.pallas_call(
        functools.partial(_embed_gather_kernel, nsem),
        out_shape=jax.ShapeDtypeStruct((ntok_pad, E), w.dtype),
        grid_spec=pltpu.PrefetchScalarGridSpec(
            num_scalar_prefetch=1,                          # ids -> SMEM
            grid=(ntok_pad // T,),
            in_specs=[pl.BlockSpec(memory_space=pl.ANY)],   # w stays in HBM
            out_specs=pl.BlockSpec((T, E), lambda i, ids: (i, 0)),
            scratch_shapes=[
                pltpu.VMEM((T, E), w.dtype),
                pltpu.SemaphoreType.DMA((nsem,)),
            ],
        ),
        compiler_params=pltpu.CompilerParams(
            dimension_semantics=("arbitrary",),
            vmem_limit_bytes=vmem_limit,
        ),
    )(ids_flat, w)


def tied_embedding_lookup(ids, w, *, block_t: int = 256, use_onehot=None):
    """ids: int32 [B, S]; w: [V, E] -> [B, S, E] (exact rows of w)."""
    B, S = ids.shape
    V, E = w.shape
    ntok = B * S
    hw = _hw_defaults()

    T = min(_round_up(block_t, 8), _round_up(ntok, 8))
    ntok_pad = _round_up(ntok, T)
    ids_flat = ids.reshape(ntok).astype(jnp.int32)
    if ntok_pad != ntok:
        ids_flat = jnp.pad(ids_flat, (0, ntok_pad - ntok))     # id 0 -> sliced off

    table_bytes = V * E * jnp.dtype(w.dtype).itemsize
    if use_onehot is None:
        # One-hot gather only pays off when the table is small enough to stay
        # VMEM-resident and V is a few K at most (its FLOPs grow with V).
        use_onehot = (V <= 4096) and (table_bytes <= hw["budget"] // 2)

    if use_onehot:
        ids2d = ids_flat.reshape(ntok_pad, 1)
        try:
            out = _onehot_lookup_call(ids2d, w, T, single_buffer_table=True,
                                      vmem_limit=hw["vmem_limit"])
        except Exception:
            # pl.Buffered(1) rejected by this pipeline version -> default spec.
            out = _onehot_lookup_call(ids2d, w, T, single_buffer_table=False,
                                      vmem_limit=hw["vmem_limit"])
    else:
        out = _dma_gather_lookup_call(ids_flat, w, T, vmem_limit=hw["vmem_limit"])

    if ntok_pad != ntok:
        out = out[:ntok]
    return out.reshape(B, S, E)


# ---------------------------------------------------------------------------
# Projection: logits = x @ w.T + b.
# Contraction is on the last (lane) axis of both (tm,E)/(tn,E) tiles -> native
# MXU form, no in-kernel transpose of w.  Tiles cast to mxu_dtype (bf16) just
# before the matmul; f32 accumulation; bias added in the finalize store.
# ---------------------------------------------------------------------------
def _proj_kernel_fused(mxu_dtype, x_ref, w_ref, b_ref, o_ref):
    acc = lax.dot_general(
        x_ref[...].astype(mxu_dtype), w_ref[...].astype(mxu_dtype),
        dimension_numbers=(((1,), (1,)), ((), ())),
        preferred_element_type=jnp.float32,
    )
    o_ref[...] = (acc + b_ref[...]).astype(o_ref.dtype)


def _proj_kernel_ktiled(mxu_dtype, x_ref, w_ref, b_ref, o_ref, acc_ref):
    k = pl.program_id(2)

    @pl.when(k == 0)
    def _():
        acc_ref[...] = jnp.zeros_like(acc_ref)

    acc_ref[...] += lax.dot_general(
        x_ref[...].astype(mxu_dtype), w_ref[...].astype(mxu_dtype),
        dimension_numbers=(((1,), (1,)), ((), ())),
        preferred_element_type=jnp.float32,
    )

    @pl.when(k == pl.num_programs(2) - 1)
    def _():
        o_ref[...] = (acc_ref[...] + b_ref[...]).astype(o_ref.dtype)


def tied_embedding_project(x, w, b, *, tm=None, tn=None, tk=None,
                           mxu_dtype=jnp.bfloat16, out_dtype=jnp.float32,
                           force_k_tiling: bool = False):
    """x: [B, S, E]; w: [V, E]; b: [V] -> [B, S, V].

    mxu_dtype=bf16 trades a little logits precision for 2-4x MXU throughput;
    pass mxu_dtype=jnp.float32 for exactness.  out_dtype=bf16 halves the
    (N, V) HBM write if downstream accepts it.
    """
    B, S, E = x.shape
    V, E2 = w.shape
    assert E == E2, (E, E2)
    N = B * S

    hw = _hw_defaults()
    tm = tm if tm is not None else hw["tm"]
    tn = tn if tn is not None else hw["tn"]
    tk = tk if tk is not None else hw["tk"]

    xw_bytes = jnp.dtype(x.dtype).itemsize
    sub = 16 if xw_bytes == 2 else 8            # bf16 sublane packing -> x16 rows
    tm = min(_round_up(tm, sub), _round_up(N, sub))
    tn = min(_round_up(tn, 128), _round_up(V, 128))

    # v7x megacore: keep >=2 blocks on a parallel axis when possible (only when
    # splitting V does not force extra padding of w).
    if _round_up(N, tm) // tm < 2 and _round_up(V, tn) // tn < 2:
        half = V // 2
        if half >= 128 and half % 128 == 0:
            tn = half

    Np = _round_up(N, tm)
    Vp = _round_up(V, tn)

    x2 = x.reshape(N, E)
    wp = w
    bp = b.reshape(1, V).astype(jnp.float32)

    # Fused (no k axis) path: x streamed from HBM exactly once, no accumulator
    # scratch, no per-k-step overhead.  Falls back to k-tiling if the resident
    # (tm, E) + (tn, E) tiles would not fit the per-generation VMEM budget.
    out_bytes = jnp.dtype(out_dtype).itemsize
    fused_vmem = (2 * (tm + tn) * E * xw_bytes     # double-buffered x/w blocks
                  + 2 * tm * tn * out_bytes        # double-buffered output block
                  + 2 * tn * 4)                    # bias (tiny; default buffering)
    use_fused = (not force_k_tiling) and fused_vmem <= hw["budget"]

    if use_fused:
        if Np != N:
            x2 = jnp.pad(x2, ((0, Np - N), (0, 0)))
        if Vp != V:
            wp = jnp.pad(wp, ((0, Vp - V), (0, 0)))
            bp = jnp.pad(bp, ((0, 0), (0, Vp - V)))
        out = pl.pallas_call(
            functools.partial(_proj_kernel_fused, mxu_dtype),
            out_shape=jax.ShapeDtypeStruct((Np, Vp), out_dtype),
            grid_spec=pltpu.PrefetchScalarGridSpec(
                num_scalar_prefetch=0,
                grid=(Np // tm, Vp // tn),
                in_specs=[
                    pl.BlockSpec((tm, E), lambda i, j: (i, 0)),   # x resident over j
                    pl.BlockSpec((tn, E), lambda i, j: (j, 0)),   # w tile, no transpose
                    pl.BlockSpec((1, tn), lambda i, j: (0, j)),   # bias tile
                ],
                out_specs=pl.BlockSpec((tm, tn), lambda i, j: (i, j)),
            ),
            compiler_params=pltpu.CompilerParams(
                dimension_semantics=("parallel", "parallel"),
                vmem_limit_bytes=hw["vmem_limit"],
            ),
        )(x2, wp, bp)
    else:
        tk = min(_round_up(tk, 128), _round_up(E, 128))
        Ep = _round_up(E, tk)
        if Np != N or Ep != E:
            x2 = jnp.pad(x2, ((0, Np - N), (0, Ep - E)))
        if Vp != V or Ep != E:
            wp = jnp.pad(wp, ((0, Vp - V), (0, Ep - E)))
        if Vp != V:
            bp = jnp.pad(bp, ((0, 0), (0, Vp - V)))
        out = pl.pallas_call(
            functools.partial(_proj_kernel_ktiled, mxu_dtype),
            out_shape=jax.ShapeDtypeStruct((Np, Vp), out_dtype),
            grid_spec=pltpu.PrefetchScalarGridSpec(
                num_scalar_prefetch=0,
                grid=(Np // tm, Vp // tn, Ep // tk),   # reduction axis last
                in_specs=[
                    pl.BlockSpec((tm, tk), lambda i, j, k: (i, k)),
                    pl.BlockSpec((tn, tk), lambda i, j, k: (j, k)),
                    pl.BlockSpec((1, tn), lambda i, j, k: (0, j)),
                ],
                out_specs=pl.BlockSpec((tm, tn), lambda i, j, k: (i, j)),
                scratch_shapes=[pltpu.VMEM((tm, tn), jnp.float32)],
            ),
            compiler_params=pltpu.CompilerParams(
                dimension_semantics=("parallel", "parallel", "arbitrary"),
                vmem_limit_bytes=hw["vmem_limit"],
            ),
        )(x2, wp, bp)

    if Np != N or Vp != V:
        out = out[:N, :V]
    return out.reshape(B, S, V)


# ---------------------------------------------------------------------------
# Module-like wrapper
# ---------------------------------------------------------------------------
class TiedEmbedding:
    def __init__(self, vocab_size: int, embedding_size: int, key):
        kw, kb = jax.random.split(key)
        # torch.randn equivalents (deterministic, synthetic init)
        self.w = jax.random.normal(kw, (vocab_size, embedding_size), jnp.float32)
        self.b = jax.random.normal(kb, (vocab_size,), jnp.float32)

    def __call__(self, inputs, embed: bool = True, **kwargs):
        if embed:
            return tied_embedding_lookup(inputs, self.w, **kwargs)
        return tied_embedding_project(inputs, self.w, self.b, **kwargs)


if __name__ == "__main__":
    key = jax.random.PRNGKey(0)
    k_mod, k_ids, k_x = jax.random.split(key, 3)

    vocab_size = 384        # 3 * 128
    embedding_size = 256    # 2 * 128
    batch, seq = 2, 8

    module = TiedEmbedding(vocab_size, embedding_size, k_mod)

    # ---------- embed=True: integer token ids -> embeddings (exact) ----------
    ids = jax.random.randint(k_ids, (batch, seq), 0, vocab_size, dtype=jnp.int32)
    emb_ref = jnp.take(module.w, ids, axis=0)

    # (a) small-vocab path: VMEM-resident table + one-hot MXU gather
    emb_out = jax.block_until_ready(module(ids, embed=True))
    assert emb_out.shape == (batch, seq, embedding_size)
    assert jnp.allclose(emb_out, emb_ref, atol=1e-5), float(
        jnp.max(jnp.abs(emb_out - emb_ref)))

    # (b) large-vocab path (forced): scalar-prefetch ids + per-row DMA gather
    emb_out2 = jax.block_until_ready(
        tied_embedding_lookup(ids, module.w, use_onehot=False))
    assert jnp.allclose(emb_out2, emb_ref, atol=1e-5), float(
        jnp.max(jnp.abs(emb_out2 - emb_ref)))

    # ---------- embed=False: hidden states -> logits over the vocab ----------
    x = jax.random.normal(k_x, (batch, seq, embedding_size), jnp.float32)
    # Kernels round x/w tiles to bf16 on the MXU (f32 accumulate); reference
    # uses the same bf16-rounded inputs with a full-precision f32 contraction.
    x_bf = x.astype(jnp.bfloat16).astype(jnp.float32)
    w_bf = module.w.astype(jnp.bfloat16).astype(jnp.float32)
    logits_ref = jnp.einsum("bse,ve->bsv", x_bf, w_bf,
                            precision=lax.Precision.HIGHEST) + module.b

    # (a) fused path (k axis dropped, x block resident across the vocab axis)
    logits = jax.block_until_ready(module(x, embed=False))
    assert logits.shape == (batch, seq, vocab_size)
    assert jnp.allclose(logits, logits_ref, atol=1e-2, rtol=1e-2), float(
        jnp.max(jnp.abs(logits - logits_ref)))

    # (b) k-tiled accumulator fallback (for E too large for VMEM residency);
    #     small tiles so the test exercises the (i, j, k) accumulation path.
    logits_k = jax.block_until_ready(
        tied_embedding_project(x, module.w, module.b,
                               tm=16, tn=128, tk=128, force_k_tiling=True))
    assert jnp.allclose(logits_k, logits_ref, atol=1e-2, rtol=1e-2), float(
        jnp.max(jnp.abs(logits_k - logits_ref)))

    print("KERNEL_OK")
</pallas_src>

<mosaic_0001>
module attributes {stable_mosaic.version = 11 : i64} {
  func.func @_embed_onehot_kernel(%arg0: i32, %arg1: memref<16x1xi32, #tpu.memory_space<vmem>>, %arg2: memref<384x256xf32, #tpu.memory_space<vmem>>, %arg3: memref<16x256xf32, #tpu.memory_space<vmem>>) attributes {dimension_semantics = [#tpu.dimension_semantics<parallel>], iteration_bounds = array<i64: 1>, scalar_prefetch = 0 : i64, scratch_operands = 0 : i64, tpu.core_type = #tpu.core_type<tc>, window_params = [{transform_indices = @transform_0, window_bounds = array<i64: 16, 1>}, {pipeline_mode = #tpu.pipeline_mode<synchronous>, transform_indices = @transform_1, window_bounds = array<i64: 384, 256>}, {transform_indices = @transform_2, window_bounds = array<i64: 16, 256>}]} {
    %c0 = arith.constant 0 : index
    %c0_0 = arith.constant 0 : index
    %0 = vector.load %arg1[%c0, %c0_0] : memref<16x1xi32, #tpu.memory_space<vmem>>, vector<16x1xi32>
    %1 = tpu.iota {dimensions = array<i32: 1>} : vector<16x384xi32>
    %2 = vector.broadcast %0 : vector<16x1xi32> to vector<16x384xi32>
    %3 = arith.cmpi eq, %2, %1 : vector<16x384xi32>
    %4 = arith.extui %3 : vector<16x384xi1> to vector<16x384xi32>
    %5 = arith.sitofp %4 : vector<16x384xi32> to vector<16x384xf32>
    %c0_1 = arith.constant 0 : index
    %c0_2 = arith.constant 0 : index
    %6 = vector.load %arg2[%c0_1, %c0_2] : memref<384x256xf32, #tpu.memory_space<vmem>>, vector<384x256xf32>
    %cst = arith.constant dense<0.000000e+00> : vector<16x256xf32>
    %7 = tpu.matmul %5, %6, %cst {dimension_numbers = #tpu.dot_dimension_numbers<[1], [0], [0], [1], [0, 0, 1, 1], [], []>} : vector<16x384xf32>, vector<384x256xf32>, vector<16x256xf32> -> vector<16x256xf32>
    %c0_3 = arith.constant 0 : index
    %c0_4 = arith.constant 0 : index
    %8 = vector.load %arg3[%c0_3, %c0_4] : memref<16x256xf32, #tpu.memory_space<vmem>>, vector<16x256xf32>
    tpu.vector_store %arg3[%c0_3, %c0_4], %7 {strides = array<i32>} : memref<16x256xf32, #tpu.memory_space<vmem>>, vector<16x256xf32>,
    return
  }
  func.func @transform_0(%arg0: i32) -> (i32, i32) {
    %c0_i32 = arith.constant 0 : i32
    %c0_i32_0 = arith.constant 0 : i32
    return %arg0, %c0_i32 : i32, i32
  }
  func.func @transform_1(%arg0: i32) -> (i32, i32) {
    %c0_i32 = arith.constant 0 : i32
    %c0_i32_0 = arith.constant 0 : i32
    %c0_i32_1 = arith.constant 0 : i32
    return %c0_i32, %c0_i32_0 : i32, i32
  }
  func.func @transform_2(%arg0: i32) -> (i32, i32) {
    %c0_i32 = arith.constant 0 : i32
    %c0_i32_0 = arith.constant 0 : i32
    return %arg0, %c0_i32 : i32, i32
  }
}

module attributes {stable_mosaic.version = 11 : i64} {
  func.func @_embed_onehot_kernel(%arg0: i32, %arg1: memref<16x1xi32, #tpu.memory_space<vmem>>, %arg2: memref<384x256xf32, #tpu.memory_space<vmem>>, %arg3: memref<16x256xf32, #tpu.memory_space<vmem>>) attributes {dimension_semantics = [#tpu.dimension_semantics<parallel>], iteration_bounds = array<i64: 1>, scalar_prefetch = 0 : i64, scratch_operands = 0 : i64, tpu.core_type = #tpu.core_type<tc>, window_params = [{transform_indices = @transform_0, window_bounds = array<i64: 16, 1>}, {pipeline_mode = #tpu.pipeline_mode<synchronous>, transform_indices = @transform_1, window_bounds = array<i64: 384, 256>}, {transform_indices = @transform_2, window_bounds = array<i64: 16, 256>}]} {
    %c0 = arith.constant 0 : index
    %c0_0 = arith.constant 0 : index
    %0 = vector.load %arg1[%c0, %c0_0] : memref<16x1xi32, #tpu.memory_space<vmem>>, vector<16x1xi32>
    %1 = tpu.iota {dimensions = array<i32: 1>} : vector<16x384xi32>
    %2 = vector.broadcast %0 : vector<16x1xi32> to vector<16x384xi32>
    %3 = arith.cmpi eq, %2, %1 : vector<16x384xi32>
    %4 = arith.extui %3 : vector<16x384xi1> to vector<16x384xi32>
    %5 = arith.sitofp %4 : vector<16x384xi32> to vector<16x384xf32>
    %c0_1 = arith.constant 0 : index
    %c0_2 = arith.constant 0 : index
    %6 = vector.load %arg2[%c0_1, %c0_2] : memref<384x256xf32, #tpu.memory_space<vmem>>, vector<384x256xf32>
    %cst = arith.constant dense<0.000000e+00> : vector<16x256xf32>
    %7 = tpu.matmul %5, %6, %cst {dimension_numbers = #tpu.dot_dimension_numbers<[1], [0], [0], [1], [0, 0, 1, 1], [], []>} : vector<16x384xf32>, vector<384x256xf32>, vector<16x256xf32> -> vector<16x256xf32>
    %c0_3 = arith.constant 0 : index
    %c0_4 = arith.constant 0 : index
    %8 = vector.load %arg3[%c0_3, %c0_4] : memref<16x256xf32, #tpu.memory_space<vmem>>, vector<16x256xf32>
    tpu.vector_store %arg3[%c0_3, %c0_4], %7 {strides = array<i32>} : memref<16x256xf32, #tpu.memory_space<vmem>>, vector<16x256xf32>,
    return
  }
  func.func @transform_0(%arg0: i32) -> (i32, i32) {
    %c0_i32 = arith.constant 0 : i32
    %c0_i32_0 = arith.constant 0 : i32
    return %arg0, %c0_i32 : i32, i32
  }
  func.func @transform_1(%arg0: i32) -> (i32, i32) {
    %c0_i32 = arith.constant 0 : i32
    %c0_i32_0 = arith.constant 0 : i32
    %c0_i32_1 = arith.constant 0 : i32
    return %c0_i32, %c0_i32_0 : i32, i32
  }
  func.func @transform_2(%arg0: i32) -> (i32, i32) {
    %c0_i32 = arith.constant 0 : i32
    %c0_i32_0 = arith.constant 0 : i32
    return %arg0, %c0_i32 : i32, i32
  }
}

</mosaic_0001>

<bundles_post_ra>
// kernel: tpu_custom_call.1
= control target key start
LH: loop header
LB: loop body
LE: loop exit
PB: predicated region body
PF: predicated region fallthrough
CT: control target
= control target key end

     0   :  { %7 = vsyncpa [#allocation3], 0  ;;  %s463_s0 = inlined_call_operand.vmem [shape: s32[16,1], index: 0, kind: input, shape index: {}]   ;;  %s464_s1 = inlined_call_operand.hbm [shape: f32[384,256], index: 1, kind: input, shape index: {}]   ;;  %s465_s2 = inlined_call_operand.hbm [shape: f32[16,256], index: 2, kind: output, shape index: {}]  }
   0x1   :  { %8 = vsyncpa [#allocation4], 0  ;;  %s15_s11 = sshll.u32 %s464_s1, 4  ;;  %s424_s12 = smov [#allocation2]   ;;  %s16_s11 = int_to_ptr.hbm [resolvable:$true] %s15_s11 }
   0x2   :  { %s17_s13 = sshll.u32 %s424_s12, 4  ;;  %s425_s14 = smov 256   ;;  %s18_s13 = int_to_ptr.vmem [resolvable:$true] %s17_s13 }
   0x3   :  { %s426_s15 = smov 16  }
   0x4   :  { %23 = dma.hbm_to_vmem [thread:$0]  %s16_s11, 12288, %s18_s13, [#allocation3], %s425_s14, %s425_s14, %s426_s15  }
   0x5   :  { %420 = dma.done.wait [#allocation3], 12288  }
   0x6   :  { %421 = vsyncadd [#allocation3], 4294955008  ;;  %v427_v0 = vmov 0   ;;  %v28_v1 = vld [vmem:[%s463_s0] sm:$0xff]  ;;  %v88_v2 = vld [vmem:[#allocation2 + $0xf0] sm:$0xff]  ;;  %s302_s22 = sshll.u32 %s465_s2, 4  ;;  %s303_s22 = int_to_ptr.hbm [resolvable:$true] %s302_s22 }
   0x7   :  { %371 = vset.pattern.permute.xlu0 %v427_v0  ;;  %154 = vmatpush.msra.mxu0 %v88_v2  ;;  %v120_v3 = vld [vmem:[#allocation2 + $0x1f0] sm:$0xff]  ;;  %v89_v5 = vld [vmem:[#allocation2 + $0xf8] sm:$0xff]  ;;  %v86_v6 = vld [vmem:[#allocation2 + $0xe0] sm:$0xff] }
   0x8   :  { %35 = vperm.xlu0 %371, %v28_v1   ;;  %v152_v4 = vld [vmem:[#allocation2 + $0x2f0] sm:$0xff]  ;;  %177 = vmatpush.msra.mxu1 %v120_v3  ;;  %v118_v7 = vld [vmem:[#allocation2 + $0x1e0] sm:$0xff]  ;;  %v87_v9 = vld [vmem:[#allocation2 + $0xe8] sm:$0xff] }
   0x9   :  { %200 = vmatpush.msra.mxu2 %v152_v4  ;;  %v150_v8 = vld [vmem:[#allocation2 + $0x2e0] sm:$0xff]  ;;  %223 = vmatpush.msra.mxu3 %v89_v5  ;;  %v84_v10 = vld [vmem:[#allocation2 + $0xd0] sm:$0xff]  ;;  %v85_v13 = vld [vmem:[#allocation2 + $0xd8] sm:$0xff] }
   0xa   :  { %155 = vmatpush.msra.mxu0 %v86_v6  ;;  %v116_v11 = vld [vmem:[#allocation2 + $0x1d0] sm:$0xff]  ;;  %178 = vmatpush.msra.mxu1 %v118_v7  ;;  %v82_v14 = vld [vmem:[#allocation2 + $0xc0] sm:$0xff]  ;;  %v29_v17 = vld [vmem:[%s463_s0 + $0x8] sm:$0xff]  ;;  %s429_s0 = smov [#allocation5]  }
   0xb   :  { %201 = vmatpush.msra.mxu2 %v150_v8  ;;  %v148_v12 = vld [vmem:[#allocation2 + $0x2d0] sm:$0xff]  ;;  %224 = vmatpush.msra.mxu3 %v87_v9  ;;  %v114_v15 = vld [vmem:[#allocation2 + $0x1c0] sm:$0xff]  ;;  %v83_v18 = vld [vmem:[#allocation2 + $0xc8] sm:$0xff]  ;;  %s300_s19 = sshll.u32 %s429_s0, 4  ;;  %s301_s19 = int_to_ptr.vmem [resolvable:$true] %s300_s19 }
   0xc   :  { %156 = vmatpush.msra.mxu0 %v84_v10  ;;  %v146_v16 = vld [vmem:[#allocation2 + $0x2c0] sm:$0xff]  ;;  %179 = vmatpush.msra.mxu1 %v116_v11  ;;  %v80_v19 = vld [vmem:[#allocation2 + $0xb0] sm:$0xff]  ;;  %v81_v22 = vld [vmem:[#allocation2 + $0xb8] sm:$0xff] }
   0xd   :  { %202 = vmatpush.msra.mxu2 %v148_v12  ;;  %225 = vmatpush.msra.mxu3 %v85_v13  ;;  %v112_v20 = vld [vmem:[#allocation2 + $0x1b0] sm:$0xff]  ;;  %v78_v23 = vld [vmem:[#allocation2 + $0xa0] sm:$0xff]  ;;  %v79_v26 = vld [vmem:[#allocation2 + $0xa8] sm:$0xff] }
   0xe   :  { %157 = vmatpush.msra.mxu0 %v82_v14  ;;  %180 = vmatpush.msra.mxu1 %v114_v15  ;;  %v144_v21 = vld [vmem:[#allocation2 + $0x2b0] sm:$0xff]  ;;  %v110_v24 = vld [vmem:[#allocation2 + $0x1a0] sm:$0xff]  ;;  %v77_v30 = vld [vmem:[#allocation2 + $0x98] sm:$0xff] }
   0xf   :  { %203 = vmatpush.msra.mxu2 %v146_v16  ;;  %226 = vmatpush.msra.mxu3 %v83_v18  ;;  %v142_v25 = vld [vmem:[#allocation2 + $0x2a0] sm:$0xff]  ;;  %v76_v27 = vld [vmem:[#allocation2 + $0x90] sm:$0xff]  ;;  %v75_v34 = vld [vmem:[#allocation2 + $0x88] sm:$0xff] }
  0x10   :  { %38 = vperm.xlu0 %371, %v29_v17   ;;  %158 = vmatpush.msra.mxu0 %v80_v19  ;;  %v108_v28 = vld [vmem:[#allocation2 + $0x190] sm:$0xff]  ;;  %v74_v31 = vld [vmem:[#allocation2 + $0x80] sm:$0xff]  ;;  %v73_v38 = vld [vmem:[#allocation2 + $0x78] sm:$0xff] }
  0x11   :  { %181 = vmatpush.msra.mxu1 %v112_v20  ;;  %204 = vmatpush.msra.mxu2 %v144_v21  ;;  %v140_v29 = vld [vmem:[#allocation2 + $0x290] sm:$0xff]  ;;  %v106_v32 = vld [vmem:[#allocation2 + $0x180] sm:$0xff]  ;;  %v71_v42 = vld [vmem:[#allocation2 + $0x68] sm:$0xff] }
  0x12   :  { %227 = vmatpush.msra.mxu3 %v81_v22  ;;  %159 = vmatpush.msra.mxu0 %v78_v23  ;;  %v138_v33 = vld [vmem:[#allocation2 + $0x280] sm:$0xff]  ;;  %v72_v35 = vld [vmem:[#allocation2 + $0x70] sm:$0xff]  ;;  %v69_v46 = vld [vmem:[#allocation2 + $0x58] sm:$0xff] }
  0x13   :  { %182 = vmatpush.msra.mxu1 %v110_v24  ;;  %205 = vmatpush.msra.mxu2 %v142_v25  ;;  %v104_v36 = vld [vmem:[#allocation2 + $0x170] sm:$0xff]  ;;  %v70_v39 = vld [vmem:[#allocation2 + $0x60] sm:$0xff]  ;;  %v67_v50 = vld [vmem:[#allocation2 + $0x48] sm:$0xff] }
  0x14   :  { %228 = vmatpush.msra.mxu3 %v79_v26  ;;  %160 = vmatpush.msra.mxu0 %v76_v27  ;;  %v136_v37 = vld [vmem:[#allocation2 + $0x270] sm:$0xff]  ;;  %v102_v40 = vld [vmem:[#allocation2 + $0x160] sm:$0xff]  ;;  %v65_v54 = vld [vmem:[#allocation2 + $0x38] sm:$0xff] }
  0x15   :  { %183 = vmatpush.msra.mxu1 %v108_v28  ;;  %206 = vmatpush.msra.mxu2 %v140_v29  ;;  %v134_v41 = vld [vmem:[#allocation2 + $0x260] sm:$0xff]  ;;  %v68_v43 = vld [vmem:[#allocation2 + $0x50] sm:$0xff]  ;;  %v63_v58 = vld [vmem:[#allocation2 + $0x28] sm:$0xff] }
  0x16   :  { %229 = vmatpush.msra.mxu3 %v77_v30  ;;  %161 = vmatpush.msra.mxu0 %v74_v31  ;;  %v100_v44 = vld [vmem:[#allocation2 + $0x150] sm:$0xff]  ;;  %v66_v47 = vld [vmem:[#allocation2 + $0x40] sm:$0xff]  ;;  %v61_v62 = vld [vmem:[#allocation2 + $0x18] sm:$0xff] }
  0x17   :  { %184 = vmatpush.msra.mxu1 %v106_v32  ;;  %207 = vmatpush.msra.mxu2 %v138_v33  ;;  %v132_v45 = vld [vmem:[#allocation2 + $0x250] sm:$0xff]  ;;  %v98_v48 = vld [vmem:[#allocation2 + $0x140] sm:$0xff]  ;;  %v59_v2 = vld [vmem:[#allocation2 + $0x8] sm:$0xff] }
  0x18   :  { %230 = vmatpush.msra.mxu3 %v75_v34  ;;  %162 = vmatpush.msra.mxu0 %v72_v35  ;;  %v130_v49 = vld [vmem:[#allocation2 + $0x240] sm:$0xff]  ;;  %v64_v51 = vld [vmem:[#allocation2 + $0x30] sm:$0xff]  ;;  %v121_v3 = vld [vmem:[#allocation2 + $0x1f8] sm:$0xff]  ;;  %v30_v35 = vlaneseq }
  0x19   :  { %185 = vmatpush.msra.mxu1 %v104_v36  ;;  %208 = vmatpush.msra.mxu2 %v136_v37  ;;  %v96_v52 = vld [vmem:[#allocation2 + $0x130] sm:$0xff]  ;;  %v62_v55 = vld [vmem:[#allocation2 + $0x20] sm:$0xff]  ;;  %v153_v4 = vld [vmem:[#allocation2 + $0x2f8] sm:$0xff] }
  0x1a   :  { %231 = vmatpush.msra.mxu3 %v73_v38  ;;  %163 = vmatpush.msra.mxu0 %v70_v39  ;;  %v128_v53 = vld [vmem:[#allocation2 + $0x230] sm:$0xff]  ;;  %v94_v56 = vld [vmem:[#allocation2 + $0x120] sm:$0xff]  ;;  %v119_v5 = vld [vmem:[#allocation2 + $0x1e8] sm:$0xff]  ;;  %v31_v36 = vand.u32 127, %v30_v35 }
  0x1b   :  { %186 = vmatpush.msra.mxu1 %v102_v40  ;;  %209 = vmatpush.msra.mxu2 %v134_v41  ;;  %v126_v57 = vld [vmem:[#allocation2 + $0x220] sm:$0xff]  ;;  %v60_v59 = vld [vmem:[#allocation2 + $0x10] sm:$0xff]  ;;  %v151_v6 = vld [vmem:[#allocation2 + $0x2e8] sm:$0xff]  ;;  %v428_v40 = vmov 1.0  }
  0x1c   :  { %232 = vmatpush.msra.mxu3 %v71_v42  ;;  %164 = vmatpush.msra.mxu0 %v68_v43  ;;  %v92_v60 = vld [vmem:[#allocation2 + $0x110] sm:$0xff]  ;;  %v58_v63 = vld [vmem:[#allocation2] sm:$0xff]  ;;  %v117_v7 = vld [vmem:[#allocation2 + $0x1d8] sm:$0xff]  ;;  %v32_v37 = vadd.s32 128, %v31_v36  ;;  %v33_v38 = vadd.s32 256, %v31_v36 }
  0x1d   :  { %187 = vmatpush.msra.mxu1 %v100_v44  ;;  %210 = vmatpush.msra.mxu2 %v132_v45  ;;  %v124_v61 = vld [vmem:[#allocation2 + $0x210] sm:$0xff]  ;;  %v90_v0 = vld [vmem:[#allocation2 + $0x100] sm:$0xff]  ;;  %v149_v8 = vld [vmem:[#allocation2 + $0x2d8] sm:$0xff] }
  0x1e   :  { %233 = vmatpush.msra.mxu3 %v69_v46  ;;  %165 = vmatpush.msra.mxu0 %v66_v47  ;;  %v122_v1 = vld [vmem:[#allocation2 + $0x200] sm:$0xff]  ;;  %v115_v9 = vld [vmem:[#allocation2 + $0x1c8] sm:$0xff]  ;;  %v113_v11 = vld [vmem:[#allocation2 + $0x1b8] sm:$0xff] }
  0x1f   :  { %188 = vmatpush.msra.mxu1 %v98_v48  ;;  %211 = vmatpush.msra.mxu2 %v130_v49  ;;  %v147_v10 = vld [vmem:[#allocation2 + $0x2c8] sm:$0xff]  ;;  %v145_v12 = vld [vmem:[#allocation2 + $0x2b8] sm:$0xff] }
  0x20   :  { %234 = vmatpush.msra.mxu3 %v67_v50  ;;  %166 = vmatpush.msra.mxu0 %v64_v51  ;;  %v111_v13 = vld [vmem:[#allocation2 + $0x1a8] sm:$0xff]  ;;  %v109_v15 = vld [vmem:[#allocation2 + $0x198] sm:$0xff] }
  0x21   :  { %189 = vmatpush.msra.mxu1 %v96_v52  ;;  %212 = vmatpush.msra.mxu2 %v128_v53  ;;  %v143_v14 = vld [vmem:[#allocation2 + $0x2a8] sm:$0xff]  ;;  %v141_v16 = vld [vmem:[#allocation2 + $0x298] sm:$0xff] }
  0x22   :  { %235 = vmatpush.msra.mxu3 %v65_v54  ;;  %167 = vmatpush.msra.mxu0 %v62_v55  ;;  %v107_v17 = vld [vmem:[#allocation2 + $0x188] sm:$0xff]  ;;  %v105_v19 = vld [vmem:[#allocation2 + $0x178] sm:$0xff] }
  0x23   :  { %190 = vmatpush.msra.mxu1 %v94_v56  ;;  %213 = vmatpush.msra.mxu2 %v126_v57  ;;  %v139_v18 = vld [vmem:[#allocation2 + $0x288] sm:$0xff]  ;;  %v137_v20 = vld [vmem:[#allocation2 + $0x278] sm:$0xff] }
  0x24   :  { %236 = vmatpush.msra.mxu3 %v63_v58  ;;  %168 = vmatpush.msra.mxu0 %v60_v59  ;;  %v103_v21 = vld [vmem:[#allocation2 + $0x168] sm:$0xff]  ;;  %v101_v23 = vld [vmem:[#allocation2 + $0x158] sm:$0xff] }
  0x25   :  { %191 = vmatpush.msra.mxu1 %v92_v60  ;;  %214 = vmatpush.msra.mxu2 %v124_v61  ;;  %v135_v22 = vld [vmem:[#allocation2 + $0x268] sm:$0xff]  ;;  %v133_v24 = vld [vmem:[#allocation2 + $0x258] sm:$0xff] }
  0x26   :  { %237 = vmatpush.msra.mxu3 %v61_v62  ;;  %169 = vmatpush.msra.mxu0 %v58_v63  ;;  %v99_v25 = vld [vmem:[#allocation2 + $0x148] sm:$0xff]  ;;  %v97_v27 = vld [vmem:[#allocation2 + $0x138] sm:$0xff] }
  0x27   :  { %192 = vmatpush.msra.mxu1 %v90_v0  ;;  %215 = vmatpush.msra.mxu2 %v122_v1  ;;  %v131_v26 = vld [vmem:[#allocation2 + $0x248] sm:$0xff]  ;;  %v129_v28 = vld [vmem:[#allocation2 + $0x238] sm:$0xff] }
  0x28   :  { %238 = vmatpush.msra.mxu3 %v59_v2  ;;  %246 = vmatpush.msrb.mxu0 %v121_v3  ;;  %v95_v29 = vld [vmem:[#allocation2 + $0x128] sm:$0xff]  ;;  %v93_v31 = vld [vmem:[#allocation2 + $0x118] sm:$0xff] }
  0x29   :  { %333 = vmatpush.msrb.mxu2 %v121_v3  ;;  %269 = vmatpush.msrb.mxu1 %v153_v4  ;;  %v127_v30 = vld [vmem:[#allocation2 + $0x228] sm:$0xff]  ;;  %v125_v32 = vld [vmem:[#allocation2 + $0x218] sm:$0xff] }
  0x2a   :  { %349 = vmatpush.msrb.mxu3 %v153_v4  ;;  %247 = vmatpush.msrb.mxu0 %v119_v5  ;;  %v91_v33 = vld [vmem:[#allocation2 + $0x108] sm:$0xff] }
  0x2b   :  { %334 = vmatpush.msrb.mxu2 %v119_v5  ;;  %270 = vmatpush.msrb.mxu1 %v151_v6  ;;  %v123_v34 = vld [vmem:[#allocation2 + $0x208] sm:$0xff] }
  0x2c   :  { %350 = vmatpush.msrb.mxu3 %v151_v6  ;;  %248 = vmatpush.msrb.mxu0 %v117_v7 }
  0x2d   :  { %335 = vmatpush.msrb.mxu2 %v117_v7  ;;  %271 = vmatpush.msrb.mxu1 %v149_v8 }
  0x2e   :  { %351 = vmatpush.msrb.mxu3 %v149_v8  ;;  %249 = vmatpush.msrb.mxu0 %v115_v9 }
  0x2f   :  { %336 = vmatpush.msrb.mxu2 %v115_v9  ;;  %272 = vmatpush.msrb.mxu1 %v147_v10 }
  0x30   :  { %352 = vmatpush.msrb.mxu3 %v147_v10  ;;  %250 = vmatpush.msrb.mxu0 %v113_v11 }
  0x31   :  { %337 = vmatpush.msrb.mxu2 %v113_v11  ;;  %273 = vmatpush.msrb.mxu1 %v145_v12 }
  0x32   :  { %353 = vmatpush.msrb.mxu3 %v145_v12  ;;  %251 = vmatpush.msrb.mxu0 %v111_v13 }
  0x33   :  { %338 = vmatpush.msrb.mxu2 %v111_v13  ;;  %274 = vmatpush.msrb.mxu1 %v143_v14 }
  0x34   :  { %354 = vmatpush.msrb.mxu3 %v143_v14  ;;  %252 = vmatpush.msrb.mxu0 %v109_v15 }
  0x35   :  { %339 = vmatpush.msrb.mxu2 %v109_v15  ;;  %275 = vmatpush.msrb.mxu1 %v141_v16 }
  0x36   :  { %355 = vmatpush.msrb.mxu3 %v141_v16  ;;  %253 = vmatpush.msrb.mxu0 %v107_v17 }
  0x37   :  { %340 = vmatpush.msrb.mxu2 %v107_v17  ;;  %276 = vmatpush.msrb.mxu1 %v139_v18 }
  0x38   :  { %356 = vmatpush.msrb.mxu3 %v139_v18  ;;  %254 = vmatpush.msrb.mxu0 %v105_v19 }
  0x39   :  { %341 = vmatpush.msrb.mxu2 %v105_v19  ;;  %277 = vmatpush.msrb.mxu1 %v137_v20 }
  0x3a   :  { %357 = vmatpush.msrb.mxu3 %v137_v20  ;;  %255 = vmatpush.msrb.mxu0 %v103_v21 }
  0x3b   :  { %342 = vmatpush.msrb.mxu2 %v103_v21  ;;  %278 = vmatpush.msrb.mxu1 %v135_v22 }
  0x3c   :  { %358 = vmatpush.msrb.mxu3 %v135_v22  ;;  %256 = vmatpush.msrb.mxu0 %v101_v23 }
  0x3d   :  { %343 = vmatpush.msrb.mxu2 %v101_v23  ;;  %279 = vmatpush.msrb.mxu1 %v133_v24 }
  0x3e   :  { %359 = vmatpush.msrb.mxu3 %v133_v24  ;;  %257 = vmatpush.msrb.mxu0 %v99_v25 }
  0x3f   :  { %344 = vmatpush.msrb.mxu2 %v99_v25  ;;  %280 = vmatpush.msrb.mxu1 %v131_v26 }
  0x40   :  { %360 = vmatpush.msrb.mxu3 %v131_v26  ;;  %258 = vmatpush.msrb.mxu0 %v97_v27 }
  0x41   :  { %345 = vmatpush.msrb.mxu2 %v97_v27  ;;  %281 = vmatpush.msrb.mxu1 %v129_v28 }
  0x42   :  { %361 = vmatpush.msrb.mxu3 %v129_v28  ;;  %259 = vmatpush.msrb.mxu0 %v95_v29 }
  0x43   :  { %346 = vmatpush.msrb.mxu2 %v95_v29  ;;  %282 = vmatpush.msrb.mxu1 %v127_v30 }
  0x44   :  { %362 = vmatpush.msrb.mxu3 %v127_v30  ;;  %260 = vmatpush.msrb.mxu0 %v93_v31 }
  0x45   :  { %347 = vmatpush.msrb.mxu2 %v93_v31  ;;  %283 = vmatpush.msrb.mxu1 %v125_v32 }
  0x46   :  { %363 = vmatpush.msrb.mxu3 %v125_v32  ;;  %261 = vmatpush.msrb.mxu0 %v91_v33 }
  0x47   :  { %348 = vmatpush.msrb.mxu2 %v91_v33  ;;  %284 = vmatpush.msrb.mxu1 %v123_v34 }
  0x48   :  { %364 = vmatpush.msrb.mxu3 %v123_v34 }
  0x7a   :  { %v36_v39 = vpop.permute.xlu0 %35 }
  0x7b   :  { %vm40_vm0 = vcmp.eq.s32.totalorder %v36_v39, %v31_v36  ;;  %vm41_vm1 = vcmp.eq.s32.totalorder %v36_v39, %v32_v37  ;;  %vm42_vm2 = vcmp.eq.s32.totalorder %v36_v39, %v33_v38 }
  0x7c   :  { %321 = vmatmul.msk.f32.vlgmr.msra.gmra.mxu0 %vm40_vm0, %v428_v40  ;;  %323 = vmatmul.msk.f32.vlgmr.msra.gmra.mxu1 %vm41_vm1, %v428_v40 }
  0x7d   :  { %325 = vmatmul.msk.f32.vlgmr.msra.gmra.mxu2 %vm42_vm2, %v428_v40  ;;  %327 = vmatmul.msk.f32.vlgmr.msra.gmra.mxu3 %vm40_vm0, %v428_v40 }
  0x82   :  { %v39_v41 = vpop.permute.xlu0 %38 }
  0x83   :  { %vm43_vm3 = vcmp.eq.s32.totalorder %v39_v41, %v31_v36  ;;  %vm44_vm4 = vcmp.eq.s32.totalorder %v39_v41, %v32_v37  ;;  %vm45_vm5 = vcmp.eq.s32.totalorder %v39_v41, %v33_v38 }
  0x84   :  { %322 = vmatmul.msk.f32.gmra.mxu0 %vm43_vm3, %v428_v40  ;;  %324 = vmatmul.msk.f32.gmra.mxu1 %vm44_vm4, %v428_v40 }
  0x85   :  { %326 = vmatmul.msk.f32.gmra.mxu2 %vm45_vm5, %v428_v40  ;;  %328 = vmatmul.msk.f32.gmra.mxu3 %vm43_vm3, %v428_v40 }
  0x8c   :  { %329 = vmatmul.msk.f32.vlgmr.msrb.gmra.mxu0 %vm41_vm1, %v428_v40  ;;  %331 = vmatmul.msk.f32.vlgmr.msrb.gmra.mxu1 %vm42_vm2, %v428_v40 }
  0x8d   :  { %330 = vmatmul.msk.f32.vlgmr.msrb.gmra.mxu2 %vm44_vm4, %v428_v40  ;;  %332 = vmatmul.msk.f32.vlgmr.msrb.gmra.mxu3 %vm45_vm5, %v428_v40 }
  0xf9   :  { %v171_v42 = vpop.f32.mrf.mxu0  ;;  %v194_v43 = vpop.f32.mrf.mxu1 }
  0xfa   :  { %v195_v44 = vadd.f32 %v194_v43, %v171_v42 }
 0x100   :  { %v217_v45 = vpop.f32.mrf.mxu2  ;;  %v240_v46 = vpop.f32.mrf.mxu3 }
 0x101   :  { %v218_v47 = vadd.f32 %v217_v45, %v195_v44  ;;  %v174_v48 = vpop.f32.mrf.mxu0  ;;  %v197_v49 = vpop.f32.mrf.mxu1 }
 0x102   :  { %v198_v50 = vadd.f32 %v197_v49, %v174_v48 }
 0x103   :  { %292 = vst [vmem:[#allocation5] sm:$0xff] %v218_v47 }
 0x108   :  { %v220_v51 = vpop.f32.mrf.mxu2  ;;  %v243_v52 = vpop.f32.mrf.mxu3 }
 0x109   :  { %v221_v53 = vadd.f32 %v220_v51, %v198_v50  ;;  %v263_v54 = vpop.f32.mrf.mxu0  ;;  %v286_v56 = vpop.f32.mrf.mxu1 }
 0x10a   :  { %v264_v55 = vadd.f32 %v263_v54, %v240_v46 }
 0x10b   :  { %294 = vst [vmem:[#allocation5 + $0x10] sm:$0xff] %v221_v53 }
 0x10c   :  { %v287_v57 = vadd.f32 %v286_v56, %v264_v55 }
 0x10e   :  { %293 = vst [vmem:[#allocation5 + $0x8] sm:$0xff] %v287_v57 }
 0x110   :  { %v266_v58 = vpop.f32.mrf.mxu2  ;;  %v289_v60 = vpop.f32.mrf.mxu3 }
 0x111   :  { %v267_v59 = vadd.f32 %v266_v58, %v243_v52 }
 0x113   :  { %v290_v61 = vadd.f32 %v289_v60, %v267_v59 }
 0x115   :  { %295 = vst [vmem:[#allocation5 + $0x18] sm:$0xff] %v290_v61 }
 0x116   :  { %308 = dma.vmem_to_hbm [thread:$0]  %s301_s19, 512, %s303_s22, [#allocation4], %s425_s14, %s425_s14, %s426_s15  }
 0x117   :  { %422 = dma.done.wait [#allocation4], 512  }
 0x118   :  { %423 = vsyncadd [#allocation4], 4294966784 }
 0x119   :  { %313 = vsyncpa [#allocation3], 1 }
 0x11a   :  { %314 = vsyncpa [#allocation4], 1 }

// kernel: tpu_custom_call.1
= control target key start
LH: loop header
LB: loop body
LE: loop exit
PB: predicated region body
PF: predicated region fallthrough
CT: control target
= control target key end

     0   :  { %7 = vsyncpa [#allocation3], 0  ;;  %s463_s0 = inlined_call_operand.vmem [shape: s32[16,1], index: 0, kind: input, shape index: {}]   ;;  %s464_s1 = inlined_call_operand.hbm [shape: f32[384,256], index: 1, kind: input, shape index: {}]   ;;  %s465_s2 = inlined_call_operand.hbm [shape: f32[16,256], index: 2, kind: output, shape index: {}]  }
   0x1   :  { %8 = vsyncpa [#allocation4], 0  ;;  %s15_s11 = sshll.u32 %s464_s1, 4  ;;  %s424_s12 = smov [#allocation2]   ;;  %s16_s11 = int_to_ptr.hbm [resolvable:$true] %s15_s11 }
   0x2   :  { %s17_s13 = sshll.u32 %s424_s12, 4  ;;  %s425_s14 = smov 256   ;;  %s18_s13 = int_to_ptr.vmem [resolvable:$true] %s17_s13 }
   0x3   :  { %s426_s15 = smov 16  }
   0x4   :  { %23 = dma.hbm_to_vmem [thread:$0]  %s16_s11, 12288, %s18_s13, [#allocation3], %s425_s14, %s425_s14, %s426_s15  }
   0x5   :  { %420 = dma.done.wait [#allocation3], 12288  }
   0x6   :  { %421 = vsyncadd [#allocation3], 4294955008  ;;  %v427_v0 = vmov 0   ;;  %v28_v1 = vld [vmem:[%s463_s0] sm:$0xff]  ;;  %v88_v2 = vld [vmem:[#allocation2 + $0xf0] sm:$0xff]  ;;  %s302_s22 = sshll.u32 %s465_s2, 4  ;;  %s303_s22 = int_to_ptr.hbm [resolvable:$true] %s302_s22 }
   0x7   :  { %371 = vset.pattern.permute.xlu0 %v427_v0  ;;  %154 = vmatpush.msra.mxu0 %v88_v2  ;;  %v120_v3 = vld [vmem:[#allocation2 + $0x1f0] sm:$0xff]  ;;  %v89_v5 = vld [vmem:[#allocation2 + $0xf8] sm:$0xff]  ;;  %v86_v6 = vld [vmem:[#allocation2 + $0xe0] sm:$0xff] }
   0x8   :  { %35 = vperm.xlu0 %371, %v28_v1   ;;  %v152_v4 = vld [vmem:[#allocation2 + $0x2f0] sm:$0xff]  ;;  %177 = vmatpush.msra.mxu1 %v120_v3  ;;  %v118_v7 = vld [vmem:[#allocation2 + $0x1e0] sm:$0xff]  ;;  %v87_v9 = vld [vmem:[#allocation2 + $0xe8] sm:$0xff] }
   0x9   :  { %200 = vmatpush.msra.mxu2 %v152_v4  ;;  %v150_v8 = vld [vmem:[#allocation2 + $0x2e0] sm:$0xff]  ;;  %223 = vmatpush.msra.mxu3 %v89_v5  ;;  %v84_v10 = vld [vmem:[#allocation2 + $0xd0] sm:$0xff]  ;;  %v85_v13 = vld [vmem:[#allocation2 + $0xd8] sm:$0xff] }
   0xa   :  { %155 = vmatpush.msra.mxu0 %v86_v6  ;;  %v116_v11 = vld [vmem:[#allocation2 + $0x1d0] sm:$0xff]  ;;  %178 = vmatpush.msra.mxu1 %v118_v7  ;;  %v82_v14 = vld [vmem:[#allocation2 + $0xc0] sm:$0xff]  ;;  %v29_v17 = vld [vmem:[%s463_s0 + $0x8] sm:$0xff]  ;;  %s429_s0 = smov [#allocation5]  }
   0xb   :  { %201 = vmatpush.msra.mxu2 %v150_v8  ;;  %v148_v12 = vld [vmem:[#allocation2 + $0x2d0] sm:$0xff]  ;;  %224 = vmatpush.msra.mxu3 %v87_v9  ;;  %v114_v15 = vld [vmem:[#allocation2 + $0x1c0] sm:$0xff]  ;;  %v83_v18 = vld [vmem:[#allocation2 + $0xc8] sm:$0xff]  ;;  %s300_s19 = sshll.u32 %s429_s0, 4  ;;  %s301_s19 = int_to_ptr.vmem [resolvable:$true] %s300_s19 }
   0xc   :  { %156 = vmatpush.msra.mxu0 %v84_v10  ;;  %v146_v16 = vld [vmem:[#allocation2 + $0x2c0] sm:$0xff]  ;;  %179 = vmatpush.msra.mxu1 %v116_v11  ;;  %v80_v19 = vld [vmem:[#allocation2 + $0xb0] sm:$0xff]  ;;  %v81_v22 = vld [vmem:[#allocation2 + $0xb8] sm:$0xff] }
   0xd   :  { %202 = vmatpush.msra.mxu2 %v148_v12  ;;  %225 = vmatpush.msra.mxu3 %v85_v13  ;;  %v112_v20 = vld [vmem:[#allocation2 + $0x1b0] sm:$0xff]  ;;  %v78_v23 = vld [vmem:[#allocation2 + $0xa0] sm:$0xff]  ;;  %v79_v26 = vld [vmem:[#allocation2 + $0xa8] sm:$0xff] }
   0xe   :  { %157 = vmatpush.msra.mxu0 %v82_v14  ;;  %180 = vmatpush.msra.mxu1 %v114_v15  ;;  %v144_v21 = vld [vmem:[#allocation2 + $0x2b0] sm:$0xff]  ;;  %v110_v24 = vld [vmem:[#allocation2 + $0x1a0] sm:$0xff]  ;;  %v77_v30 = vld [vmem:[#allocation2 + $0x98] sm:$0xff] }
   0xf   :  { %203 = vmatpush.msra.mxu2 %v146_v16  ;;  %226 = vmatpush.msra.mxu3 %v83_v18  ;;  %v142_v25 = vld [vmem:[#allocation2 + $0x2a0] sm:$0xff]  ;;  %v76_v27 = vld [vmem:[#allocation2 + $0x90] sm:$0xff]  ;;  %v75_v34 = vld [vmem:[#allocation2 + $0x88] sm:$0xff] }
  0x10   :  { %38 = vperm.xlu0 %371, %v29_v17   ;;  %158 = vmatpush.msra.mxu0 %v80_v19  ;;  %v108_v28 = vld [vmem:[#allocation2 + $0x190] sm:$0xff]  ;;  %v74_v31 = vld [vmem:[#allocation2 + $0x80] sm:$0xff]  ;;  %v73_v38 = vld [vmem:[#allocation2 + $0x78] sm:$0xff] }
  0x11   :  { %181 = vmatpush.msra.mxu1 %v112_v20  ;;  %204 = vmatpush.msra.mxu2 %v144_v21  ;;  %v140_v29 = vld [vmem:[#allocation2 + $0x290] sm:$0xff]  ;;  %v106_v32 = vld [vmem:[#allocation2 + $0x180] sm:$0xff]  ;;  %v71_v42 = vld [vmem:[#allocation2 + $0x68] sm:$0xff] }
  0x12   :  { %227 = vmatpush.msra.mxu3 %v81_v22  ;;  %159 = vmatpush.msra.mxu0 %v78_v23  ;;  %v138_v33 = vld [vmem:[#allocation2 + $0x280] sm:$0xff]  ;;  %v72_v35 = vld [vmem:[#allocation2 + $0x70] sm:$0xff]  ;;  %v69_v46 = vld [vmem:[#allocation2 + $0x58] sm:$0xff] }
  0x13   :  { %182 = vmatpush.msra.mxu1 %v110_v24  ;;  %205 = vmatpush.msra.mxu2 %v142_v25  ;;  %v104_v36 = vld [vmem:[#allocation2 + $0x170] sm:$0xff]  ;;  %v70_v39 = vld [vmem:[#allocation2 + $0x60] sm:$0xff]  ;;  %v67_v50 = vld [vmem:[#allocation2 + $0x48] sm:$0xff] }
  0x14   :  { %228 = vmatpush.msra.mxu3 %v79_v26  ;;  %160 = vmatpush.msra.mxu0 %v76_v27  ;;  %v136_v37 = vld [vmem:[#allocation2 + $0x270] sm:$0xff]  ;;  %v102_v40 = vld [vmem:[#allocation2 + $0x160] sm:$0xff]  ;;  %v65_v54 = vld [vmem:[#allocation2 + $0x38] sm:$0xff] }
  0x15   :  { %183 = vmatpush.msra.mxu1 %v108_v28  ;;  %206 = vmatpush.msra.mxu2 %v140_v29  ;;  %v134_v41 = vld [vmem:[#allocation2 + $0x260] sm:$0xff]  ;;  %v68_v43 = vld [vmem:[#allocation2 + $0x50] sm:$0xff]  ;;  %v63_v58 = vld [vmem:[#allocation2 + $0x28] sm:$0xff] }
  0x16   :  { %229 = vmatpush.msra.mxu3 %v77_v30  ;;  %161 = vmatpush.msra.mxu0 %v74_v31  ;;  %v100_v44 = vld [vmem:[#allocation2 + $0x150] sm:$0xff]  ;;  %v66_v47 = vld [vmem:[#allocation2 + $0x40] sm:$0xff]  ;;  %v61_v62 = vld [vmem:[#allocation2 + $0x18] sm:$0xff] }
  0x17   :  { %184 = vmatpush.msra.mxu1 %v106_v32  ;;  %207 = vmatpush.msra.mxu2 %v138_v33  ;;  %v132_v45 = vld [vmem:[#allocation2 + $0x250] sm:$0xff]  ;;  %v98_v48 = vld [vmem:[#allocation2 + $0x140] sm:$0xff]  ;;  %v59_v2 = vld [vmem:[#allocation2 + $0x8] sm:$0xff] }
  0x18   :  { %230 = vmatpush.msra.mxu3 %v75_v34  ;;  %162 = vmatpush.msra.mxu0 %v72_v35  ;;  %v130_v49 = vld [vmem:[#allocation2 + $0x240] sm:$0xff]  ;;  %v64_v51 = vld [vmem:[#allocation2 + $0x30] sm:$0xff]  ;;  %v121_v3 = vld [vmem:[#allocation2 + $0x1f8] sm:$0xff]  ;;  %v30_v35 = vlaneseq }
  0x19   :  { %185 = vmatpush.msra.mxu1 %v104_v36  ;;  %208 = vmatpush.msra.mxu2 %v136_v37  ;;  %v96_v52 = vld [vmem:[#allocation2 + $0x130] sm:$0xff]  ;;  %v62_v55 = vld [vmem:[#allocation2 + $0x20] sm:$0xff]  ;;  %v153_v4 = vld [vmem:[#allocation2 + $0x2f8] sm:$0xff] }
  0x1a   :  { %231 = vmatpush.msra.mxu3 %v73_v38  ;;  %163 = vmatpush.msra.mxu0 %v70_v39  ;;  %v128_v53 = vld [vmem:[#allocation2 + $0x230] sm:$0xff]  ;;  %v94_v56 = vld [vmem:[#allocation2 + $0x120] sm:$0xff]  ;;  %v119_v5 = vld [vmem:[#allocation2 + $0x1e8] sm:$0xff]  ;;  %v31_v36 = vand.u32 127, %v30_v35 }
  0x1b   :  { %186 = vmatpush.msra.mxu1 %v102_v40  ;;  %209 = vmatpush.msra.mxu2 %v134_v41  ;;  %v126_v57 = vld [vmem:[#allocation2 + $0x220] sm:$0xff]  ;;  %v60_v59 = vld [vmem:[#allocation2 + $0x10] sm:$0xff]  ;;  %v151_v6 = vld [vmem:[#allocation2 + $0x2e8] sm:$0xff]  ;;  %v428_v40 = vmov 1.0  }
  0x1c   :  { %232 = vmatpush.msra.mxu3 %v71_v42  ;;  %164 = vmatpush.msra.mxu0 %v68_v43  ;;  %v92_v60 = vld [vmem:[#allocation2 + $0x110] sm:$0xff]  ;;  %v58_v63 = vld [vmem:[#allocation2] sm:$0xff]  ;;  %v117_v7 = vld [vmem:[#allocation2 + $0x1d8] sm:$0xff]  ;;  %v32_v37 = vadd.s32 128, %v31_v36  ;;  %v33_v38 = vadd.s32 256, %v31_v36 }
  0x1d   :  { %187 = vmatpush.msra.mxu1 %v100_v44  ;;  %210 = vmatpush.msra.mxu2 %v132_v45  ;;  %v124_v61 = vld [vmem:[#allocation2 + $0x210] sm:$0xff]  ;;  %v90_v0 = vld [vmem:[#allocation2 + $0x100] sm:$0xff]  ;;  %v149_v8 = vld [vmem:[#allocation2 + $0x2d8] sm:$0xff] }
  0x1e   :  { %233 = vmatpush.msra.mxu3 %v69_v46  ;;  %165 = vmatpush.msra.mxu0 %v66_v47  ;;  %v122_v1 = vld [vmem:[#allocation2 + $0x200] sm:$0xff]  ;;  %v115_v9 = vld [vmem:[#allocation2 + $0x1c8] sm:$0xff]  ;;  %v113_v11 = vld [vmem:[#allocation2 + $0x1b8] sm:$0xff] }
  0x1f   :  { %188 = vmatpush.msra.mxu1 %v98_v48  ;;  %211 = vmatpush.msra.mxu2 %v130_v49  ;;  %v147_v10 = vld [vmem:[#allocation2 + $0x2c8] sm:$0xff]  ;;  %v145_v12 = vld [vmem:[#allocation2 + $0x2b8] sm:$0xff] }
  0x20   :  { %234 = vmatpush.msra.mxu3 %v67_v50  ;;  %166 = vmatpush.msra.mxu0 %v64_v51  ;;  %v111_v13 = vld [vmem:[#allocation2 + $0x1a8] sm:$0xff]  ;;  %v109_v15 = vld [vmem:[#allocation2 + $0x198] sm:$0xff] }
  0x21   :  { %189 = vmatpush.msra.mxu1 %v96_v52  ;;  %212 = vmatpush.msra.mxu2 %v128_v53  ;;  %v143_v14 = vld [vmem:[#allocation2 + $0x2a8] sm:$0xff]  ;;  %v141_v16 = vld [vmem:[#allocation2 + $0x298] sm:$0xff] }
  0x22   :  { %235 = vmatpush.msra.mxu3 %v65_v54  ;;  %167 = vmatpush.msra.mxu0 %v62_v55  ;;  %v107_v17 = vld [vmem:[#allocation2 + $0x188] sm:$0xff]  ;;  %v105_v19 = vld [vmem:[#allocation2 + $0x178] sm:$0xff] }
  0x23   :  { %190 = vmatpush.msra.mxu1 %v94_v56  ;;  %213 = vmatpush.msra.mxu2 %v126_v57  ;;  %v139_v18 = vld [vmem:[#allocation2 + $0x288] sm:$0xff]  ;;  %v137_v20 = vld [vmem:[#allocation2 + $0x278] sm:$0xff] }
  0x24   :  { %236 = vmatpush.msra.mxu3 %v63_v58  ;;  %168 = vmatpush.msra.mxu0 %v60_v59  ;;  %v103_v21 = vld [vmem:[#allocation2 + $0x168] sm:$0xff]  ;;  %v101_v23 = vld [vmem:[#allocation2 + $0x158] sm:$0xff] }
  0x25   :  { %191 = vmatpush.msra.mxu1 %v92_v60  ;;  %214 = vmatpush.msra.mxu2 %v124_v61  ;;  %v135_v22 = vld [vmem:[#allocation2 + $0x268] sm:$0xff]  ;;  %v133_v24 = vld [vmem:[#allocation2 + $0x258] sm:$0xff] }
  0x26   :  { %237 = vmatpush.msra.mxu3 %v61_v62  ;;  %169 = vmatpush.msra.mxu0 %v58_v63  ;;  %v99_v25 = vld [vmem:[#allocation2 + $0x148] sm:$0xff]  ;;  %v97_v27 = vld [vmem:[#allocation2 + $0x138] sm:$0xff] }
  0x27   :  { %192 = vmatpush.msra.mxu1 %v90_v0  ;;  %215 = vmatpush.msra.mxu2 %v122_v1  ;;  %v131_v26 = vld [vmem:[#allocation2 + $0x248] sm:$0xff]  ;;  %v129_v28 = vld [vmem:[#allocation2 + $0x238] sm:$0xff] }
  0x28   :  { %238 = vmatpush.msra.mxu3 %v59_v2  ;;  %246 = vmatpush.msrb.mxu0 %v121_v3  ;;  %v95_v29 = vld [vmem:[#allocation2 + $0x128] sm:$0xff]  ;;  %v93_v31 = vld [vmem:[#allocation2 + $0x118] sm:$0xff] }
  0x29   :  { %333 = vmatpush.msrb.mxu2 %v121_v3  ;;  %269 = vmatpush.msrb.mxu1 %v153_v4  ;;  %v127_v30 = vld [vmem:[#allocation2 + $0x228] sm:$0xff]  ;;  %v125_v32 = vld [vmem:[#allocation2 + $0x218] sm:$0xff] }
  0x2a   :  { %349 = vmatpush.msrb.mxu3 %v153_v4  ;;  %247 = vmatpush.msrb.mxu0 %v119_v5  ;;  %v91_v33 = vld [vmem:[#allocation2 + $0x108] sm:$0xff] }
  0x2b   :  { %334 = vmatpush.msrb.mxu2 %v119_v5  ;;  %270 = vmatpush.msrb.mxu1 %v151_v6  ;;  %v123_v34 = vld [vmem:[#allocation2 + $0x208] sm:$0xff] }
  0x2c   :  { %350 = vmatpush.msrb.mxu3 %v151_v6  ;;  %248 = vmatpush.msrb.mxu0 %v117_v7 }
  0x2d   :  { %335 = vmatpush.msrb.mxu2 %v117_v7  ;;  %271 = vmatpush.msrb.mxu1 %v149_v8 }
  0x2e   :  { %351 = vmatpush.msrb.mxu3 %v149_v8  ;;  %249 = vmatpush.msrb.mxu0 %v115_v9 }
  0x2f   :  { %336 = vmatpush.msrb.mxu2 %v115_v9  ;;  %272 = vmatpush.msrb.mxu1 %v147_v10 }
  0x30   :  { %352 = vmatpush.msrb.mxu3 %v147_v10  ;;  %250 = vmatpush.msrb.mxu0 %v113_v11 }
  0x31   :  { %337 = vmatpush.msrb.mxu2 %v113_v11  ;;  %273 = vmatpush.msrb.mxu1 %v145_v12 }
  0x32   :  { %353 = vmatpush.msrb.mxu3 %v145_v12  ;;  %251 = vmatpush.msrb.mxu0 %v111_v13 }
  0x33   :  { %338 = vmatpush.msrb.mxu2 %v111_v13  ;;  %274 = vmatpush.msrb.mxu1 %v143_v14 }
  0x34   :  { %354 = vmatpush.msrb.mxu3 %v143_v14  ;;  %252 = vmatpush.msrb.mxu0 %v109_v15 }
  0x35   :  { %339 = vmatpush.msrb.mxu2 %v109_v15  ;;  %275 = vmatpush.msrb.mxu1 %v141_v16 }
  0x36   :  { %355 = vmatpush.msrb.mxu3 %v141_v16  ;;  %253 = vmatpush.msrb.mxu0 %v107_v17 }
  0x37   :  { %340 = vmatpush.msrb.mxu2 %v107_v17  ;;  %276 = vmatpush.msrb.mxu1 %v139_v18 }
  0x38   :  { %356 = vmatpush.msrb.mxu3 %v139_v18  ;;  %254 = vmatpush.msrb.mxu0 %v105_v19 }
  0x39   :  { %341 = vmatpush.msrb.mxu2 %v105_v19  ;;  %277 = vmatpush.msrb.mxu1 %v137_v20 }
  0x3a   :  { %357 = vmatpush.msrb.mxu3 %v137_v20  ;;  %255 = vmatpush.msrb.mxu0 %v103_v21 }
  0x3b   :  { %342 = vmatpush.msrb.mxu2 %v103_v21  ;;  %278 = vmatpush.msrb.mxu1 %v135_v22 }
  0x3c   :  { %358 = vmatpush.msrb.mxu3 %v135_v22  ;;  %256 = vmatpush.msrb.mxu0 %v101_v23 }
  0x3d   :  { %343 = vmatpush.msrb.mxu2 %v101_v23  ;;  %279 = vmatpush.msrb.mxu1 %v133_v24 }
  0x3e   :  { %359 = vmatpush.msrb.mxu3 %v133_v24  ;;  %257 = vmatpush.msrb.mxu0 %v99_v25 }
  0x3f   :  { %344 = vmatpush.msrb.mxu2 %v99_v25  ;;  %280 = vmatpush.msrb.mxu1 %v131_v26 }
  0x40   :  { %360 = vmatpush.msrb.mxu3 %v131_v26  ;;  %258 = vmatpush.msrb.mxu0 %v97_v27 }
  0x41   :  { %345 = vmatpush.msrb.mxu2 %v97_v27  ;;  %281 = vmatpush.msrb.mxu1 %v129_v28 }
  0x42   :  { %361 = vmatpush.msrb.mxu3 %v129_v28  ;;  %259 = vmatpush.msrb.mxu0 %v95_v29 }
  0x43   :  { %346 = vmatpush.msrb.mxu2 %v95_v29  ;;  %282 = vmatpush.msrb.mxu1 %v127_v30 }
  0x44   :  { %362 = vmatpush.msrb.mxu3 %v127_v30  ;;  %260 = vmatpush.msrb.mxu0 %v93_v31 }
  0x45   :  { %347 = vmatpush.msrb.mxu2 %v93_v31  ;;  %283 = vmatpush.msrb.mxu1 %v125_v32 }
  0x46   :  { %363 = vmatpush.msrb.mxu3 %v125_v32  ;;  %261 = vmatpush.msrb.mxu0 %v91_v33 }
  0x47   :  { %348 = vmatpush.msrb.mxu2 %v91_v33  ;;  %284 = vmatpush.msrb.mxu1 %v123_v34 }
  0x48   :  { %364 = vmatpush.msrb.mxu3 %v123_v34 }
  0x7a   :  { %v36_v39 = vpop.permute.xlu0 %35 }
  0x7b   :  { %vm40_vm0 = vcmp.eq.s32.totalorder %v36_v39, %v31_v36  ;;  %vm41_vm1 = vcmp.eq.s32.totalorder %v36_v39, %v32_v37  ;;  %vm42_vm2 = vcmp.eq.s32.totalorder %v36_v39, %v33_v38 }
  0x7c   :  { %321 = vmatmul.msk.f32.vlgmr.msra.gmra.mxu0 %vm40_vm0, %v428_v40  ;;  %323 = vmatmul.msk.f32.vlgmr.msra.gmra.mxu1 %vm41_vm1, %v428_v40 }
  0x7d   :  { %325 = vmatmul.msk.f32.vlgmr.msra.gmra.mxu2 %vm42_vm2, %v428_v40  ;;  %327 = vmatmul.msk.f32.vlgmr.msra.gmra.mxu3 %vm40_vm0, %v428_v40 }
  0x82   :  { %v39_v41 = vpop.permute.xlu0 %38 }
  0x83   :  { %vm43_vm3 = vcmp.eq.s32.totalorder %v39_v41, %v31_v36  ;;  %vm44_vm4 = vcmp.eq.s32.totalorder %v39_v41, %v32_v37  ;;  %vm45_vm5 = vcmp.eq.s32.totalorder %v39_v41, %v33_v38 }
  0x84   :  { %322 = vmatmul.msk.f32.gmra.mxu0 %vm43_vm3, %v428_v40  ;;  %324 = vmatmul.msk.f32.gmra.mxu1 %vm44_vm4, %v428_v40 }
  0x85   :  { %326 = vmatmul.msk.f32.gmra.mxu2 %vm45_vm5, %v428_v40  ;;  %328 = vmatmul.msk.f32.gmra.mxu3 %vm43_vm3, %v428_v40 }
  0x8c   :  { %329 = vmatmul.msk.f32.vlgmr.msrb.gmra.mxu0 %vm41_vm1, %v428_v40  ;;  %331 = vmatmul.msk.f32.vlgmr.msrb.gmra.mxu1 %vm42_vm2, %v428_v40 }
  0x8d   :  { %330 = vmatmul.msk.f32.vlgmr.msrb.gmra.mxu2 %vm44_vm4, %v428_v40  ;;  %332 = vmatmul.msk.f32.vlgmr.msrb.gmra.mxu3 %vm45_vm5, %v428_v40 }
  0xf9   :  { %v171_v42 = vpop.f32.mrf.mxu0  ;;  %v194_v43 = vpop.f32.mrf.mxu1 }
  0xfa   :  { %v195_v44 = vadd.f32 %v194_v43, %v171_v42 }
 0x100   :  { %v217_v45 = vpop.f32.mrf.mxu2  ;;  %v240_v46 = vpop.f32.mrf.mxu3 }
 0x101   :  { %v218_v47 = vadd.f32 %v217_v45, %v195_v44  ;;  %v174_v48 = vpop.f32.mrf.mxu0  ;;  %v197_v49 = vpop.f32.mrf.mxu1 }
 0x102   :  { %v198_v50 = vadd.f32 %v197_v49, %v174_v48 }
 0x103   :  { %292 = vst [vmem:[#allocation5] sm:$0xff] %v218_v47 }
 0x108   :  { %v220_v51 = vpop.f32.mrf.mxu2  ;;  %v243_v52 = vpop.f32.mrf.mxu3 }
 0x109   :  { %v221_v53 = vadd.f32 %v220_v51, %v198_v50  ;;  %v263_v54 = vpop.f32.mrf.mxu0  ;;  %v286_v56 = vpop.f32.mrf.mxu1 }
 0x10a   :  { %v264_v55 = vadd.f32 %v263_v54, %v240_v46 }
 0x10b   :  { %294 = vst [vmem:[#allocation5 + $0x10] sm:$0xff] %v221_v53 }
 0x10c   :  { %v287_v57 = vadd.f32 %v286_v56, %v264_v55 }
 0x10e   :  { %293 = vst [vmem:[#allocation5 + $0x8] sm:$0xff] %v287_v57 }
 0x110   :  { %v266_v58 = vpop.f32.mrf.mxu2  ;;  %v289_v60 = vpop.f32.mrf.mxu3 }
 0x111   :  { %v267_v59 = vadd.f32 %v266_v58, %v243_v52 }
 0x113   :  { %v290_v61 = vadd.f32 %v289_v60, %v267_v59 }
 0x115   :  { %295 = vst [vmem:[#allocation5 + $0x18] sm:$0xff] %v290_v61 }
 0x116   :  { %308 = dma.vmem_to_hbm [thread:$0]  %s301_s19, 512, %s303_s22, [#allocation4], %s425_s14, %s425_s14, %s426_s15  }
 0x117   :  { %422 = dma.done.wait [#allocation4], 512  }
 0x118   :  { %423 = vsyncadd [#allocation4], 4294966784 }
 0x119   :  { %313 = vsyncpa [#allocation3], 1 }
 0x11a   :  { %314 = vsyncpa [#allocation4], 1 }

</bundles_post_ra>
